<compile_context>
chip_gen: v7x
topology: tpu7x:2x2x1
jax: 0.10.0
libtpu: 0.0.40
codegen_flags: <defaults>
</compile_context>

<pallas_src>
import jax
import jax.numpy as jnp
from jax.experimental import pallas as pl
from jax.experimental.pallas import tpu as pltpu


_LANE = 128
_TINY_BYTES = 1 * 1024 * 1024            # below this, plain JAX (fusion/overhead wins)
_TARGET_BLOCK_BYTES = 4 * 1024 * 1024    # ~4 MiB/block; 2 arrays x 2 buffers = 16 MiB resident
_VMEM_LIMIT_BYTES = 32 * 1024 * 1024     # explicit scoped-VMEM limit (safe on v5e/v6e/v7x)
_MIN_STEPS = 4                           # >= 2 grid steps per TensorCore on v7x


def _double_kernel(x_ref, o_ref):
    # elementwise hot path: y = x + x (purely memory-bound)
    x = x_ref[...]
    o_ref[...] = x + x


def _launch(x2: jax.Array, tr: int) -> jax.Array:
    rows, cols = x2.shape
    itemsize = jnp.dtype(x2.dtype).itemsize
    total = rows * cols
    grid = (pl.cdiv(rows, tr),)
    return pl.pallas_call(
        _double_kernel,
        out_shape=jax.ShapeDtypeStruct((rows, cols), x2.dtype),
        grid_spec=pltpu.PrefetchScalarGridSpec(
            num_scalar_prefetch=0,
            grid=grid,
            in_specs=[pl.BlockSpec((tr, cols), lambda i: (i, 0))],
            out_specs=pl.BlockSpec((tr, cols), lambda i: (i, 0)),
        ),
        compiler_params=pltpu.CompilerParams(
            dimension_semantics=("parallel",),
            vmem_limit_bytes=_VMEM_LIMIT_BYTES,
        ),
        cost_estimate=pl.CostEstimate(
            flops=total,
            transcendentals=0,
            bytes_accessed=2 * total * itemsize,
        ),
        # TODO(synk): if the caller can donate x, add input_output_aliases={0: 0}
        # to reuse the input HBM buffer; omitted here so x stays valid for checks.
    )(x2)


def _choose_layout(total: int, row_mult: int):
    """Pick a lane-dense (rows, cols) layout, preferring rows >= row_mult."""
    candidates = (4096, 2048, 1024, 512, 256, _LANE)
    # First pass: largest cols that keeps at least one full packed-sublane group.
    for c in candidates:
        if total % c == 0 and total // c >= row_mult:
            return total // c, c
    # Second pass: any divisible lane-dense cols (rows may be < row_mult).
    for c in candidates:
        if total % c == 0:
            return total // c, c
    return None  # cannot form a lane-dense layout


def _choose_row_tile(rows: int, cols: int, itemsize: int, row_mult: int) -> int:
    bytes_per_row = cols * itemsize
    tr_budget = max(1, _TARGET_BLOCK_BYTES // bytes_per_row)
    tr_budget = max(row_mult, (tr_budget // row_mult) * row_mult)
    tr = min(tr_budget, rows)

    steps = pl.cdiv(rows, tr)
    if steps < _MIN_STEPS:
        # Ensure >= _MIN_STEPS steps (>= 2 per TC on v7x) when there is enough
        # work; otherwise fall back to >= 2 steps; otherwise keep one step.
        if rows >= _MIN_STEPS * row_mult:
            tr = max(row_mult, ((rows // _MIN_STEPS) // row_mult) * row_mult)
        elif rows >= 2 * row_mult:
            tr = max(row_mult, ((rows // 2) // row_mult) * row_mult)
    return max(1, min(tr, rows))


def module_with_grad_func_forward(x: jax.Array, *, force_kernel: bool = False) -> jax.Array:
    """Forward of ModuleWithGradFunc(CustomFunc1): y = x + x (same shape/dtype)."""
    orig_shape = x.shape
    total = int(x.size)
    itemsize = jnp.dtype(x.dtype).itemsize

    # Tiny tensors: skip Pallas, let XLA fuse the add.
    if total == 0 or (not force_kernel and total * itemsize < _TINY_BYTES):
        return x + x

    # Packed-sublane multiple: 8 rows/vreg at 32-bit, 16 for bf16, 32 for int8/fp8.
    packing = max(1, 4 // itemsize)
    row_mult = 8 * packing

    layout = _choose_layout(total, row_mult)
    if layout is None:
        # Lane-sparse Pallas (masked vst.msk stores) is slower than letting XLA
        # handle the add at HBM roofline, so bypass rather than pad.
        return x + x
    rows, cols = layout
    x2 = x.reshape(rows, cols)

    tr = _choose_row_tile(rows, cols, itemsize, row_mult)
    out2 = _launch(x2, tr)
    return out2.reshape(orig_shape)


if __name__ == "__main__":
    key = jax.random.PRNGKey(0)
    k1, k2, k3 = jax.random.split(key, 3)

    # 1) Small NCHW test shape from the module's test context (tiny-bypass path,
    #    then forced through the Pallas kernel to validate the kernel itself).
    x_small = jax.random.normal(k1, (2, 4, 16, 16), dtype=jnp.float32)
    y_small_bypass = jax.block_until_ready(module_with_grad_func_forward(x_small))
    y_small_kernel = jax.block_until_ready(
        module_with_grad_func_forward(x_small, force_kernel=True)
    )
    ref_small = x_small + x_small
    assert y_small_bypass.shape == x_small.shape and y_small_bypass.dtype == x_small.dtype
    assert y_small_kernel.shape == x_small.shape and y_small_kernel.dtype == x_small.dtype
    assert jnp.array_equal(y_small_bypass, ref_small)
    assert jnp.array_equal(y_small_kernel, ref_small)

    # 2) Larger f32 input exercising the multi-step (>= 4 grid steps),
    #    lane-dense pipelined path.
    x_big = jax.random.normal(k2, (8, 16, 64, 64), dtype=jnp.float32)  # 2 MiB
    y_big = jax.block_until_ready(module_with_grad_func_forward(x_big))
    assert y_big.shape == x_big.shape and y_big.dtype == x_big.dtype
    assert jnp.array_equal(y_big, x_big + x_big)

    # 3) bf16 input, forced through the kernel, to validate packed-sublane tiling.
    x_bf16 = jax.random.normal(k3, (16, 8, 32, 32), dtype=jnp.bfloat16)
    y_bf16 = jax.block_until_ready(
        module_with_grad_func_forward(x_bf16, force_kernel=True)
    )
    assert y_bf16.shape == x_bf16.shape and y_bf16.dtype == x_bf16.dtype
    assert jnp.array_equal(y_bf16, x_bf16 + x_bf16)

    # 4) Odd-sized tensor (not a multiple of 128 elements) exercises the
    #    lane-sparse bypass path.
    x_odd = jax.random.normal(k1, (3, 5, 7), dtype=jnp.float32)
    y_odd = jax.block_until_ready(module_with_grad_func_forward(x_odd, force_kernel=True))
    assert jnp.array_equal(y_odd, x_odd + x_odd)

    print("KERNEL_OK")
</pallas_src>

<mosaic_0001>
module attributes {stable_mosaic.version = 11 : i64} {
  func.func @_double_kernel(%arg0: i32, %arg1: memref<8x256xf32, #tpu.memory_space<vmem>>, %arg2: memref<8x256xf32, #tpu.memory_space<vmem>>) attributes {dimension_semantics = [#tpu.dimension_semantics<parallel>], iteration_bounds = array<i64: 1>, scalar_prefetch = 0 : i64, scratch_operands = 0 : i64, tpu.core_type = #tpu.core_type<tc>, window_params = [{transform_indices = @transform_0, window_bounds = array<i64: 8, 256>}, {transform_indices = @transform_1, window_bounds = array<i64: 8, 256>}]} {
    %c0 = arith.constant 0 : index
    %c0_0 = arith.constant 0 : index
    %0 = vector.load %arg1[%c0, %c0_0] : memref<8x256xf32, #tpu.memory_space<vmem>>, vector<8x256xf32>
    %1 = arith.addf %0, %0 : vector<8x256xf32>
    %c0_1 = arith.constant 0 : index
    %c0_2 = arith.constant 0 : index
    %2 = vector.load %arg2[%c0_1, %c0_2] : memref<8x256xf32, #tpu.memory_space<vmem>>, vector<8x256xf32>
    tpu.vector_store %arg2[%c0_1, %c0_2], %1 {strides = array<i32>} : memref<8x256xf32, #tpu.memory_space<vmem>>, vector<8x256xf32>,
    return
  }
  func.func @transform_0(%arg0: i32) -> (i32, i32) {
    %c0_i32 = arith.constant 0 : i32
    %c0_i32_0 = arith.constant 0 : i32
    return %arg0, %c0_i32 : i32, i32
  }
  func.func @transform_1(%arg0: i32) -> (i32, i32) {
    %c0_i32 = arith.constant 0 : i32
    %c0_i32_0 = arith.constant 0 : i32
    return %arg0, %c0_i32 : i32, i32
  }
}

</mosaic_0001>

<bundles_post_ra>
// kernel: tpu_custom_call.1
= control target key start
LH: loop header
LB: loop body
LE: loop exit
PB: predicated region body
PF: predicated region fallthrough
CT: control target
= control target key end

     0   :  { %6 = vsyncpa [#allocation3], 0  ;;  %s128_s0 = inlined_call_operand.hbm [shape: f32[8,256], index: 0, kind: input, shape index: {}]   ;;  %s129_s1 = inlined_call_operand.hbm [shape: f32[8,256], index: 1, kind: output, shape index: {}]  }
   0x1   :  { %7 = vsyncpa [#allocation4], 0  ;;  %s92_s6 = smov [#allocation2]   ;;  %s44_s10 = scalar_lea.hbm %s128_s0, 256 }
   0x2   :  { %s14_s7 = sshll.u32 %s92_s6, 4  ;;  %p45_p0 = scmp.ne.s32.totalorder %s128_s0, %s44_s10  ;;  %s15_s7 = int_to_ptr.vmem [resolvable:$true] %s14_s7 }
   0x3   :  { %p48_p1 = scmp.lt.u32.totalorder %s44_s10, %s128_s0 }
   0x5   :  { %p50_p2 = pnand %p48_p1, %p45_p0 }
   0x7   :  { %53 = shalt.err (!%p50_p2)
}
   0x8   :  { %s54_s15 = scalar_lea.vmem %s15_s7, 256  ;;  %p59_p4 = scmp.lt.s32.totalorder %s15_s7, %s15_s7 }
   0x9   :  { %p55_p3 = scmp.ne.s32.totalorder %s15_s7, %s54_s15  ;;  %p60_p5 = scmp.lt.s32.totalorder %s54_s15, %s54_s15 }
   0xb   :  { %p61_p6 = por %p60_p5, %p59_p4 }
   0xd   :  { %p62_p7 = pnand %p61_p6, %p55_p3 }
   0xf   :  { %65 = shalt.err (!%p62_p7)
}
  0x10   :  { %17 = dma.hbm_to_vmem [thread:$0]  %s128_s0, 256, %s15_s7, [#allocation3]  }
  0x11   :  { %88 = dma.done.wait [#allocation3], 256  }
  0x12   :  { %89 = vsyncadd [#allocation3], 4294967040  ;;  %s93_s18 = smov [#allocation5]   ;;  %v21_v0 = vld [vmem:[#allocation2] sm:$0xff]  ;;  %v22_v1 = vld [vmem:[#allocation2 + $0x8] sm:$0xff] }
  0x13   :  { %s33_s19 = sshll.u32 %s93_s18, 4  ;;  %v23_v2 = vadd.f32 %v21_v0, %v21_v0  ;;  %v24_v3 = vadd.f32 %v22_v1, %v22_v1  ;;  %s34_s19 = int_to_ptr.vmem [resolvable:$true] %s33_s19 }
  0x14   :  { %s66_s20 = scalar_lea.vmem %s34_s19, 256  ;;  %p71_p9 = scmp.lt.s32.totalorder %s34_s19, %s34_s19 }
  0x15   :  { %25 = vst [vmem:[#allocation5] sm:$0xff] %v23_v2  ;;  %26 = vst [vmem:[#allocation5 + $0x8] sm:$0xff] %v24_v3  ;;  %p67_p8 = scmp.ne.s32.totalorder %s34_s19, %s66_s20  ;;  %p72_p10 = scmp.lt.s32.totalorder %s66_s20, %s66_s20 }
  0x17   :  { %p73_p11 = por %p72_p10, %p71_p9 }
  0x19   :  { %p74_p12 = pnand %p73_p11, %p67_p8 }
  0x1b   :  { %77 = shalt.err (!%p74_p12)
}
  0x1c   :  { %s78_s22 = scalar_lea.hbm %s129_s1, 256 }
  0x1d   :  { %p79_p13 = scmp.ne.s32.totalorder %s129_s1, %s78_s22  ;;  %p82_p0 = scmp.lt.u32.totalorder %s78_s22, %s129_s1 }
  0x1f   :  { %p84_p1 = pnand %p82_p0, %p79_p13 }
  0x21   :  { %87 = shalt.err (!%p84_p1)
}
  0x22   :  { %36 = dma.vmem_to_hbm [thread:$0]  %s34_s19, 256, %s129_s1, [#allocation4]  }
  0x23   :  { %90 = dma.done.wait [#allocation4], 256  }
  0x24   :  { %91 = vsyncadd [#allocation4], 4294967040 }
  0x25   :  { %40 = vsyncpa [#allocation3], 1 }
  0x26   :  { %41 = vsyncpa [#allocation4], 1 }

</bundles_post_ra>
